<compile_context>
chip_gen: v6e
topology: v6e:2x2x1
jax: 0.10.0
libtpu: 0.0.40
codegen_flags: <defaults>
</compile_context>

<pallas_src>
import math
import functools

import jax
import jax.numpy as jnp
from jax.experimental import pallas as pl
from jax.experimental.pallas import tpu as pltpu


_VMEM_LIMIT = 32 * 1024 * 1024  # explicit scoped-VMEM budget (safe on v5e/v6e/v7x)


def _round_up(n, m):
    return ((n + m - 1) // m) * m


def _ln(h, gamma, beta, eps):
    mean = jnp.mean(h, axis=-1, keepdims=True)
    var = jnp.mean(jnp.square(h - mean), axis=-1, keepdims=True)
    return (h - mean) * jax.lax.rsqrt(var + eps) * gamma + beta


def _row_tiling(R, tile_rows=128):
    TR = min(tile_rows, _round_up(R, 8))
    Rp = _round_up(R, TR)
    return TR, Rp


def _mosaic_params():
    return pltpu.CompilerParams(dimension_semantics=("parallel",),
                                vmem_limit_bytes=_VMEM_LIMIT)


# ----------------------------------------------------------------------------
# Kernel 1: feature_encoder (concat folded) fused with attention K/V projection
# ----------------------------------------------------------------------------
def _feat_enc_kv_kernel(loc_ref, pd_ref, pi_ref,
                        w1a_ref, w1pd_ref, w1pi_ref, b1_ref, g1_ref, be1_ref,
                        w2_ref, b2_ref, g2_ref, be2_ref,
                        wkv_ref, bkv_ref, kv_ref, *, eps):
    # combined = [local | pure_data | pure_intensities]  ->  split matmul + rank-1 VPU terms.
    h = (jnp.dot(loc_ref[...], w1a_ref[...], preferred_element_type=jnp.float32)
         + pd_ref[...] * w1pd_ref[...]
         + pi_ref[...] * w1pi_ref[...]
         + b1_ref[...])
    h = jnp.maximum(_ln(h, g1_ref[...], be1_ref[...], eps), 0.0)
    fe = jnp.dot(h, w2_ref[...], preferred_element_type=jnp.float32) + b2_ref[...]
    fe = _ln(fe, g2_ref[...], be2_ref[...], eps)
    # Fused K/V projection (feature_embeddings only feed the attention K/V path).
    kv = jnp.dot(fe, wkv_ref[...], preferred_element_type=jnp.float32) + bkv_ref[...]
    kv_ref[...] = kv.astype(kv_ref.dtype)


def feature_encoder_kv(local, pd, pi, p, wkv, bkv, *, eps=1e-5, tile_rows=128):
    """local: [R, H4], pd/pi: [R, 1].  Returns kv = [K | V] of shape [R, 2D]."""
    R, H4 = local.shape
    H2 = p["w1"].shape[1]
    D = p["w2"].shape[1]
    Dout = wkv.shape[1]
    TR, Rp = _row_tiling(R, tile_rows)
    if Rp != R:
        local = jnp.pad(local, ((0, Rp - R), (0, 0)))
        pd = jnp.pad(pd, ((0, Rp - R), (0, 0)))
        pi = jnp.pad(pi, ((0, Rp - R), (0, 0)))
    w1a = p["w1"][:H4]
    w1pd = p["w1"][H4:H4 + 1]
    w1pi = p["w1"][H4 + 1:H4 + 2]
    weights = (w1a, w1pd, w1pi, p["b1"], p["g1"], p["beta1"],
               p["w2"], p["b2"], p["g2"], p["beta2"], wkv, bkv)
    out = pl.pallas_call(
        functools.partial(_feat_enc_kv_kernel, eps=eps),
        out_shape=jax.ShapeDtypeStruct((Rp, Dout), local.dtype),
        grid=(Rp // TR,),
        in_specs=[pl.BlockSpec((TR, H4), lambda i: (i, 0)),
                  pl.BlockSpec((TR, 1), lambda i: (i, 0)),
                  pl.BlockSpec((TR, 1), lambda i: (i, 0))]
                 + [pl.BlockSpec(w.shape, lambda i: (0, 0)) for w in weights],
        out_specs=pl.BlockSpec((TR, Dout), lambda i: (i, 0)),
        compiler_params=_mosaic_params(),
        cost_estimate=pl.CostEstimate(
            flops=2 * Rp * (H4 * H2 + H2 * D + D * Dout),
            transcendentals=2 * Rp,
            bytes_accessed=4 * (Rp * (H4 + 2 + Dout) + H4 * H2 + H2 * D + D * Dout)),
    )(local, pd, pi, *weights)
    return out[:R]


# ----------------------------------------------------------------------------
# Kernel 2: token_mixing + residual + channel_mixing + residual + Q projection
# ----------------------------------------------------------------------------
def _mixer_q_kernel(x_ref,
                    tw1, tb1, tg1, tbe1, tw2, tb2, tg2, tbe2,
                    cw1, cb1, cg1, cbe1, cw2, cb2, cg2, cbe2,
                    wq, bq, mf_ref, q_ref, *, eps):
    x = x_ref[...].astype(jnp.float32)
    h = jnp.dot(x, tw1[...], preferred_element_type=jnp.float32) + tb1[...]
    h = jnp.maximum(_ln(h, tg1[...], tbe1[...], eps), 0.0)
    y = jnp.dot(h, tw2[...], preferred_element_type=jnp.float32) + tb2[...]
    x1 = _ln(y, tg2[...], tbe2[...], eps) + x
    h = jnp.dot(x1, cw1[...], preferred_element_type=jnp.float32) + cb1[...]
    h = jnp.maximum(_ln(h, cg1[...], cbe1[...], eps), 0.0)
    y = jnp.dot(h, cw2[...], preferred_element_type=jnp.float32) + cb2[...]
    mf = _ln(y, cg2[...], cbe2[...], eps) + x1
    mf_ref[...] = mf.astype(mf_ref.dtype)
    q = jnp.dot(mf, wq[...], preferred_element_type=jnp.float32) + bq[...]
    q_ref[...] = q.astype(q_ref.dtype)


def mixer_q(x, tok_p, ch_p, wq, bq, *, eps=1e-5, tile_rows=128):
    """x: [R, D] row-folded mixture features.  Returns (mixed mf [R, D], query proj [R, D])."""
    R, D = x.shape
    Dh = tok_p["w1"].shape[1]
    TR, Rp = _row_tiling(R, tile_rows)
    if Rp != R:
        x = jnp.pad(x, ((0, Rp - R), (0, 0)))
    weights = (tok_p["w1"], tok_p["b1"], tok_p["g1"], tok_p["beta1"],
               tok_p["w2"], tok_p["b2"], tok_p["g2"], tok_p["beta2"],
               ch_p["w1"], ch_p["b1"], ch_p["g1"], ch_p["beta1"],
               ch_p["w2"], ch_p["b2"], ch_p["g2"], ch_p["beta2"],
               wq, bq)
    mf, q = pl.pallas_call(
        functools.partial(_mixer_q_kernel, eps=eps),
        out_shape=(jax.ShapeDtypeStruct((Rp, D), x.dtype),
                   jax.ShapeDtypeStruct((Rp, D), x.dtype)),
        grid=(Rp // TR,),
        in_specs=[pl.BlockSpec((TR, D), lambda i: (i, 0))]
                 + [pl.BlockSpec(w.shape, lambda i: (0, 0)) for w in weights],
        out_specs=[pl.BlockSpec((TR, D), lambda i: (i, 0)),
                   pl.BlockSpec((TR, D), lambda i: (i, 0))],
        compiler_params=_mosaic_params(),
        cost_estimate=pl.CostEstimate(
            flops=2 * Rp * (2 * (D * Dh + Dh * D) + D * D),
            transcendentals=4 * Rp,
            bytes_accessed=4 * (3 * Rp * D + 4 * D * Dh + D * D)),
    )(x, *weights)
    return mf[:R], q[:R]


# ----------------------------------------------------------------------------
# Kernel 3: per-batch multi-head attention core + fused (importance-weighted) out projection
# ----------------------------------------------------------------------------
def _mha_kernel(q_ref, k_ref, v_ref, wo_ref, bo_ref, o_ref, *, scale):
    q = q_ref[0]          # [H, Sq, hd]
    k = k_ref[0]          # [H, Skv, hd]
    v = v_ref[0]          # [H, Skv, hd]
    # QK^T for every head at once, contracting the last dims (no explicit transpose).
    s = jnp.einsum("hqd,hkd->hqk", q, k, preferred_element_type=jnp.float32) * scale
    m = jnp.max(s, axis=-1, keepdims=True)
    e = jnp.exp(s - m)
    p = e * pl.reciprocal(jnp.sum(e, axis=-1, keepdims=True), approx=True)
    # TODO(synk): attn_dropout is eval-mode identity (no stochastic mask applied).
    ctx = jnp.einsum("hqk,hkd->hqd", p, v, preferred_element_type=jnp.float32)
    # Fused output projection: Wo reshaped per-head to [H, hd, D]; heads merged by the sum.
    proj = jnp.einsum("hqd,hdo->hqo", ctx, wo_ref[...], preferred_element_type=jnp.float32)
    o_ref[0] = (jnp.sum(proj, axis=0) + bo_ref[...]).astype(o_ref.dtype)
    # NOTE: for large Skv, tile the KV axis flash-style (online softmax) instead of
    # materializing the full [H, Sq, Skv] score block (v7x 64 MiB VMEM budget).


def mha_core(qh, kh, vh, wo_r, bo, *, scale):
    """qh: [B, H, Sq, hd], kh/vh: [B, H, Skv, hd], wo_r: [H, hd, D], bo: [1, D] -> [B, Sq, D]."""
    B, H, Sq, hd = qh.shape
    Skv = kh.shape[2]
    D = wo_r.shape[2]
    return pl.pallas_call(
        functools.partial(_mha_kernel, scale=scale),
        out_shape=jax.ShapeDtypeStruct((B, Sq, D), qh.dtype),
        grid=(B,),
        in_specs=[
            pl.BlockSpec((1, H, Sq, hd), lambda b: (b, 0, 0, 0)),
            pl.BlockSpec((1, H, Skv, hd), lambda b: (b, 0, 0, 0)),
            pl.BlockSpec((1, H, Skv, hd), lambda b: (b, 0, 0, 0)),
            pl.BlockSpec((H, hd, D), lambda b: (0, 0, 0)),
            pl.BlockSpec((1, D), lambda b: (0, 0)),
        ],
        out_specs=pl.BlockSpec((1, Sq, D), lambda b: (b, 0, 0)),
        compiler_params=_mosaic_params(),
        cost_estimate=pl.CostEstimate(
            flops=4 * B * H * Sq * Skv * hd + 2 * B * H * Sq * hd * D,
            transcendentals=B * H * Sq * Skv,
            bytes_accessed=4 * (B * H * (Sq + 2 * Skv) * hd + H * hd * D + B * Sq * D)),
    )(qh, kh, vh, wo_r, bo)


# ----------------------------------------------------------------------------
# Kernel 4: fusion MLP (concat as split matmuls) + final residual
# ----------------------------------------------------------------------------
def _fusion_kernel(mf_ref, wt_ref,
                   w1a_ref, w1b_ref, b1_ref, g1_ref, be1_ref,
                   w2_ref, b2_ref, g2_ref, be2_ref, o_ref, *, eps):
    mf = mf_ref[...].astype(jnp.float32)
    h = (jnp.dot(mf, w1a_ref[...], preferred_element_type=jnp.float32)
         + jnp.dot(wt_ref[...], w1b_ref[...], preferred_element_type=jnp.float32)
         + b1_ref[...])
    h = jnp.maximum(_ln(h, g1_ref[...], be1_ref[...], eps), 0.0)
    y = jnp.dot(h, w2_ref[...], preferred_element_type=jnp.float32) + b2_ref[...]
    y = _ln(y, g2_ref[...], be2_ref[...], eps)
    o_ref[...] = (y + mf).astype(o_ref.dtype)


def fusion_block(mf, weighted, p, *, eps=1e-5, tile_rows=128):
    """mf/weighted: [R, D].  Returns fusion([mf | weighted]) + mf of shape [R, D]."""
    R, D = mf.shape
    Dh = p["w1"].shape[1]
    TR, Rp = _row_tiling(R, tile_rows)
    if Rp != R:
        mf = jnp.pad(mf, ((0, Rp - R), (0, 0)))
        weighted = jnp.pad(weighted, ((0, Rp - R), (0, 0)))
    w1a, w1b = p["w1"][:D], p["w1"][D:]
    weights = (w1a, w1b, p["b1"], p["g1"], p["beta1"],
               p["w2"], p["b2"], p["g2"], p["beta2"])
    out = pl.pallas_call(
        functools.partial(_fusion_kernel, eps=eps),
        out_shape=jax.ShapeDtypeStruct((Rp, D), mf.dtype),
        grid=(Rp // TR,),
        in_specs=[pl.BlockSpec((TR, D), lambda i: (i, 0)),
                  pl.BlockSpec((TR, D), lambda i: (i, 0))]
                 + [pl.BlockSpec(w.shape, lambda i: (0, 0)) for w in weights],
        out_specs=pl.BlockSpec((TR, D), lambda i: (i, 0)),
        compiler_params=_mosaic_params(),
        cost_estimate=pl.CostEstimate(
            flops=2 * Rp * (2 * D * Dh + Dh * D),
            transcendentals=2 * Rp,
            bytes_accessed=4 * (3 * Rp * D + 3 * D * Dh)),
    )(mf, weighted, *weights)
    return out[:R]


# ----------------------------------------------------------------------------
# Conv / BatchNorm front-end (plain JAX)
# ----------------------------------------------------------------------------
# TODO(synk): local_feature_net (dilated Conv1d + eval-mode BatchNorm1d) is left to XLA via
# lax.conv_general_dilated; tiny-channel dilated convs have no clean/portable Pallas mapping.
def _conv1d(x, w, b, *, dilation, padding):
    out = jax.lax.conv_general_dilated(
        x, w, window_strides=(1,), padding=[(padding, padding)],
        rhs_dilation=(dilation,), dimension_numbers=("NCH", "OIH", "NCH"))
    return out + b[None, :, None]


def _batchnorm_eval(x, gamma, beta, mean, var, eps=1e-5):
    inv = jax.lax.rsqrt(var + eps)
    return (x - mean[None, :, None]) * (gamma * inv)[None, :, None] + beta[None, :, None]


def _local_feature_net(pure_data, local_params):
    h = pure_data[:, None, :]  # [B, 1, L]
    for cp, dil in zip(local_params, (1, 2, 4)):
        h = _conv1d(h, cp["w"], cp["b"], dilation=dil, padding=dil)
        h = _batchnorm_eval(h, cp["bn_gamma"], cp["bn_beta"], cp["bn_mean"], cp["bn_var"])
        h = jnp.maximum(h, 0.0)
    return jnp.transpose(h, (0, 2, 1))  # [B, L, hidden//4]


# ----------------------------------------------------------------------------
# Full MatchingMLPMixer forward (Pallas hot path: 4 kernel launches)
# ----------------------------------------------------------------------------
def matching_mlp_mixer_forward(params, pure_data, pure_intensities, mixture_features,
                               *, num_heads=4):
    B, L = pure_data.shape
    S, D = mixture_features.shape[1], mixture_features.shape[2]
    hd = D // num_heads
    ap = params["attn"]

    local_features = _local_feature_net(pure_data, params["local"])          # [B, L, H4]
    # TODO(synk): peak_shape_net output is computed but unused by the reference forward -> omitted.

    # feature_encoder MLP + fused K/V projection (concat folded into split matmuls).
    wkv = jnp.concatenate([ap["wk"], ap["wv"]], axis=1)     # [D, 2D]
    bkv = jnp.concatenate([ap["bk"], ap["bv"]], axis=1)     # [1, 2D]
    kv = feature_encoder_kv(local_features.reshape(B * L, -1),
                            pure_data.reshape(B * L, 1),
                            pure_intensities.reshape(B * L, 1),
                            params["feature_encoder"], wkv, bkv)             # [B*L, 2D]
    kh = kv[:, :D].reshape(B, L, num_heads, hd).transpose(0, 2, 1, 3)        # [B, H, L, hd]
    vh = kv[:, D:].reshape(B, L, num_heads, hd).transpose(0, 2, 1, 3)

    # token_mixing + channel_mixing (with residuals) + fused Q projection.
    mf, q = mixer_q(mixture_features.reshape(B * S, D),
                    params["token_mixing"], params["channel_mixing"],
                    ap["wq"], ap["bq"])                                      # [B*S, D] x2
    qh = q.reshape(B, S, num_heads, hd).transpose(0, 2, 1, 3)                # [B, H, S, hd]

    # Attention core with the importance-weighted output projection fused in:
    # (ctx@Wo+bo)*imp == ctx@(Wo*imp) + bo*imp, and Wo reshaped per head to [H, hd, D].
    importance = jax.nn.softmax(params["feature_weights"])
    wo_r = (ap["wo"] * importance[None, :]).reshape(num_heads, hd, D)
    bo_r = ap["bo"] * importance[None, :]
    weighted = mha_core(qh, kh, vh, wo_r, bo_r, scale=1.0 / math.sqrt(hd))   # [B, S, D]

    # fusion MLP over [mf | weighted] (split matmuls) + final residual.
    fused = fusion_block(mf, weighted.reshape(B * S, D), params["fusion"])   # [B*S, D]
    return fused.reshape(B, S, D)
    # TODO(synk): attention_maps bookkeeping is a debug side effect and is not reproduced.


# ----------------------------------------------------------------------------
# Parameter init (Linear weights stored pre-transposed as [in, out])
# ----------------------------------------------------------------------------
def init_params(key, input_dim, hidden_dim):
    H4, H2 = hidden_dim // 4, hidden_dim // 2
    keys = iter(jax.random.split(key, 64))

    def lin(din, dout):
        bound = 1.0 / math.sqrt(din)
        w = jax.random.uniform(next(keys), (din, dout), jnp.float32, -bound, bound)
        b = jax.random.uniform(next(keys), (1, dout), jnp.float32, -bound, bound)
        return w, b

    def mlp(din, dh, dout):
        w1, b1 = lin(din, dh)
        w2, b2 = lin(dh, dout)
        return {"w1": w1, "b1": b1, "g1": jnp.ones((1, dh)), "beta1": jnp.zeros((1, dh)),
                "w2": w2, "b2": b2, "g2": jnp.ones((1, dout)), "beta2": jnp.zeros((1, dout))}

    def conv(cin, cout, k):
        bound = 1.0 / math.sqrt(cin * k)
        return {"w": jax.random.uniform(next(keys), (cout, cin, k), jnp.float32, -bound, bound),
                "b": jax.random.uniform(next(keys), (cout,), jnp.float32, -bound, bound),
                "bn_gamma": jnp.ones((cout,)), "bn_beta": jnp.zeros((cout,)),
                "bn_mean": jnp.zeros((cout,)), "bn_var": jnp.ones((cout,))}

    attn = {}
    for name in ("q", "k", "v", "o"):
        w, b = lin(input_dim, input_dim)
        attn["w" + name], attn["b" + name] = w, b

    return {
        "local": [conv(1, H4, 3), conv(H4, H4, 3), conv(H4, H4, 3)],
        "feature_encoder": mlp(H4 + 2, H2, input_dim),
        "token_mixing": mlp(input_dim, hidden_dim, input_dim),
        "channel_mixing": mlp(input_dim, hidden_dim, input_dim),
        "fusion": mlp(2 * input_dim, hidden_dim, input_dim),
        "attn": attn,
        "feature_weights": jnp.ones((input_dim,), jnp.float32),
    }


# ----------------------------------------------------------------------------
# Pure-JAX reference of the PyTorch forward (eval mode)
# ----------------------------------------------------------------------------
def _ref_ln(h, g, b, eps=1e-5):
    m = jnp.mean(h, -1, keepdims=True)
    v = jnp.mean(jnp.square(h - m), -1, keepdims=True)
    return (h - m) / jnp.sqrt(v + eps) * g + b


def _ref_mlp(x, p, eps=1e-5):
    h = jnp.maximum(_ref_ln(x @ p["w1"] + p["b1"], p["g1"], p["beta1"], eps), 0.0)
    return _ref_ln(h @ p["w2"] + p["b2"], p["g2"], p["beta2"], eps)


def _ref_attention(q_in, kv_in, p, num_heads):
    B, Sq, D = q_in.shape
    Skv = kv_in.shape[1]
    hd = D // num_heads
    q = (q_in @ p["wq"] + p["bq"]).reshape(B, Sq, num_heads, hd).transpose(0, 2, 1, 3)
    k = (kv_in @ p["wk"] + p["bk"]).reshape(B, Skv, num_heads, hd).transpose(0, 2, 1, 3)
    v = (kv_in @ p["wv"] + p["bv"]).reshape(B, Skv, num_heads, hd).transpose(0, 2, 1, 3)
    s = jnp.einsum("bhqd,bhkd->bhqk", q, k) / math.sqrt(hd)
    pr = jax.nn.softmax(s, axis=-1)
    ctx = jnp.einsum("bhqk,bhkd->bhqd", pr, v).transpose(0, 2, 1, 3).reshape(B, Sq, D)
    return ctx @ p["wo"] + p["bo"]


def reference_forward(params, pure_data, pure_intensities, mixture_features, *, num_heads=4):
    local_features = _local_feature_net(pure_data, params["local"])
    combined = jnp.concatenate(
        [local_features, pure_data[..., None], pure_intensities[..., None]], axis=-1)
    feature_embeddings = _ref_mlp(combined, params["feature_encoder"])
    mf = mixture_features
    mf = _ref_mlp(mf, params["token_mixing"]) + mf
    mf = _ref_mlp(mf, params["channel_mixing"]) + mf
    matched = _ref_attention(mf, feature_embeddings, params["attn"], num_heads)
    weighted = matched * jax.nn.softmax(params["feature_weights"])
    fused = _ref_mlp(jnp.concatenate([mf, weighted], axis=-1), params["fusion"])
    return fused + mf


if __name__ == "__main__":
    B, L, S = 2, 16, 8          # batch, pure-signal length, mixture sequence length
    INPUT_DIM, HIDDEN_DIM, HEADS = 32, 32, 4

    key = jax.random.PRNGKey(0)
    k_pd, k_pi, k_mf, k_p = jax.random.split(key, 4)
    pure_data = jax.random.normal(k_pd, (B, L), dtype=jnp.float32)
    pure_intensities = jax.random.normal(k_pi, (B, L), dtype=jnp.float32)
    mixture_features = jax.random.normal(k_mf, (B, S, INPUT_DIM), dtype=jnp.float32)
    params = init_params(k_p, INPUT_DIM, HIDDEN_DIM)

    out = matching_mlp_mixer_forward(params, pure_data, pure_intensities, mixture_features,
                                     num_heads=HEADS)
    out = jax.block_until_ready(out)

    ref = reference_forward(params, pure_data, pure_intensities, mixture_features,
                            num_heads=HEADS)
    assert out.shape == (B, S, INPUT_DIM)
    assert jnp.allclose(out, ref, atol=3e-3, rtol=3e-3), "Pallas output mismatch vs reference"

    print("KERNEL_OK")
</pallas_src>

<mosaic_0001>
module attributes {stable_mosaic.version = 11 : i64} {
  func.func @_feat_enc_kv_kernel(%arg0: i32, %arg1: memref<32x8xf32, #tpu.memory_space<vmem>>, %arg2: memref<32x1xf32, #tpu.memory_space<vmem>>, %arg3: memref<32x1xf32, #tpu.memory_space<vmem>>, %arg4: memref<8x16xf32, #tpu.memory_space<vmem>>, %arg5: memref<1x16xf32, #tpu.memory_space<vmem>>, %arg6: memref<1x16xf32, #tpu.memory_space<vmem>>, %arg7: memref<1x16xf32, #tpu.memory_space<vmem>>, %arg8: memref<1x16xf32, #tpu.memory_space<vmem>>, %arg9: memref<1x16xf32, #tpu.memory_space<vmem>>, %arg10: memref<16x32xf32, #tpu.memory_space<vmem>>, %arg11: memref<1x32xf32, #tpu.memory_space<vmem>>, %arg12: memref<1x32xf32, #tpu.memory_space<vmem>>, %arg13: memref<1x32xf32, #tpu.memory_space<vmem>>, %arg14: memref<32x64xf32, #tpu.memory_space<vmem>>, %arg15: memref<1x64xf32, #tpu.memory_space<vmem>>, %arg16: memref<32x64xf32, #tpu.memory_space<vmem>>) attributes {dimension_semantics = [#tpu.dimension_semantics<parallel>], iteration_bounds = array<i64: 1>, scalar_prefetch = 0 : i64, scratch_operands = 0 : i64, tpu.core_type = #tpu.core_type<tc>, window_params = [{transform_indices = @transform_0, window_bounds = array<i64: 32, 8>}, {transform_indices = @transform_1, window_bounds = array<i64: 32, 1>}, {transform_indices = @transform_2, window_bounds = array<i64: 32, 1>}, {pipeline_mode = #tpu.pipeline_mode<synchronous>, transform_indices = @transform_3, window_bounds = array<i64: 8, 16>}, {pipeline_mode = #tpu.pipeline_mode<synchronous>, transform_indices = @transform_4, window_bounds = array<i64: 1, 16>}, {pipeline_mode = #tpu.pipeline_mode<synchronous>, transform_indices = @transform_5, window_bounds = array<i64: 1, 16>}, {pipeline_mode = #tpu.pipeline_mode<synchronous>, transform_indices = @transform_6, window_bounds = array<i64: 1, 16>}, {pipeline_mode = #tpu.pipeline_mode<synchronous>, transform_indices = @transform_7, window_bounds = array<i64: 1, 16>}, {pipeline_mode = #tpu.pipeline_mode<synchronous>, transform_indices = @transform_8, window_bounds = array<i64: 1, 16>}, {pipeline_mode = #tpu.pipeline_mode<synchronous>, transform_indices = @transform_9, window_bounds = array<i64: 16, 32>}, {pipeline_mode = #tpu.pipeline_mode<synchronous>, transform_indices = @transform_10, window_bounds = array<i64: 1, 32>}, {pipeline_mode = #tpu.pipeline_mode<synchronous>, transform_indices = @transform_11, window_bounds = array<i64: 1, 32>}, {pipeline_mode = #tpu.pipeline_mode<synchronous>, transform_indices = @transform_12, window_bounds = array<i64: 1, 32>}, {pipeline_mode = #tpu.pipeline_mode<synchronous>, transform_indices = @transform_13, window_bounds = array<i64: 32, 64>}, {pipeline_mode = #tpu.pipeline_mode<synchronous>, transform_indices = @transform_14, window_bounds = array<i64: 1, 64>}, {transform_indices = @transform_15, window_bounds = array<i64: 32, 64>}]} {
    %c0 = arith.constant 0 : index
    %c0_0 = arith.constant 0 : index
    %0 = vector.load %arg1[%c0, %c0_0] : memref<32x8xf32, #tpu.memory_space<vmem>>, vector<32x8xf32>
    %c0_1 = arith.constant 0 : index
    %c0_2 = arith.constant 0 : index
    %1 = vector.load %arg4[%c0_1, %c0_2] : memref<8x16xf32, #tpu.memory_space<vmem>>, vector<8x16xf32>
    %cst = arith.constant dense<0.000000e+00> : vector<32x16xf32>
    %2 = tpu.matmul %0, %1, %cst {dimension_numbers = #tpu.dot_dimension_numbers<[1], [0], [0], [1], [0, 0, 1, 1], [], []>} : vector<32x8xf32>, vector<8x16xf32>, vector<32x16xf32> -> vector<32x16xf32>
    %c0_3 = arith.constant 0 : index
    %c0_4 = arith.constant 0 : index
    %3 = vector.load %arg2[%c0_3, %c0_4] : memref<32x1xf32, #tpu.memory_space<vmem>>, vector<32x1xf32>
    %c0_5 = arith.constant 0 : index
    %c0_6 = arith.constant 0 : index
    %4 = vector.load %arg5[%c0_5, %c0_6] : memref<1x16xf32, #tpu.memory_space<vmem>>, vector<1x16xf32>
    %5 = vector.broadcast %3 : vector<32x1xf32> to vector<32x16xf32>
    %6 = vector.broadcast %4 : vector<1x16xf32> to vector<32x16xf32>
    %7 = arith.mulf %5, %6 : vector<32x16xf32>
    %8 = arith.addf %2, %7 : vector<32x16xf32>
    %c0_7 = arith.constant 0 : index
    %c0_8 = arith.constant 0 : index
    %9 = vector.load %arg3[%c0_7, %c0_8] : memref<32x1xf32, #tpu.memory_space<vmem>>, vector<32x1xf32>
    %c0_9 = arith.constant 0 : index
    %c0_10 = arith.constant 0 : index
    %10 = vector.load %arg6[%c0_9, %c0_10] : memref<1x16xf32, #tpu.memory_space<vmem>>, vector<1x16xf32>
    %11 = vector.broadcast %9 : vector<32x1xf32> to vector<32x16xf32>
    %12 = vector.broadcast %10 : vector<1x16xf32> to vector<32x16xf32>
    %13 = arith.mulf %11, %12 : vector<32x16xf32>
    %14 = arith.addf %8, %13 : vector<32x16xf32>
    %c0_11 = arith.constant 0 : index
    %c0_12 = arith.constant 0 : index
    %15 = vector.load %arg7[%c0_11, %c0_12] : memref<1x16xf32, #tpu.memory_space<vmem>>, vector<1x16xf32>
    %16 = vector.broadcast %15 : vector<1x16xf32> to vector<32x16xf32>
    %17 = arith.addf %14, %16 : vector<32x16xf32>
    %c0_13 = arith.constant 0 : index
    %c0_14 = arith.constant 0 : index
    %18 = vector.load %arg8[%c0_13, %c0_14] : memref<1x16xf32, #tpu.memory_space<vmem>>, vector<1x16xf32>
    %c0_15 = arith.constant 0 : index
    %c0_16 = arith.constant 0 : index
    %19 = vector.load %arg9[%c0_15, %c0_16] : memref<1x16xf32, #tpu.memory_space<vmem>>, vector<1x16xf32>
    %cst_17 = arith.constant dense<0.000000e+00> : vector<32xf32>
    %20 = vector.multi_reduction <add>, %17, %cst_17 [1] : vector<32x16xf32> to vector<32xf32>
    %21 = vector.shape_cast %20 : vector<32xf32> to vector<32x1xf32>
    %cst_18 = arith.constant 1.600000e+01 : f32
    %22 = vector.broadcast %cst_18 : f32 to vector<32x1xf32>
    %23 = arith.divf %21, %22 : vector<32x1xf32>
    %24 = vector.broadcast %23 : vector<32x1xf32> to vector<32x16xf32>
    %25 = arith.subf %17, %24 : vector<32x16xf32>
    %26 = arith.mulf %25, %25 : vector<32x16xf32>
    %cst_19 = arith.constant dense<0.000000e+00> : vector<32xf32>
    %27 = vector.multi_reduction <add>, %26, %cst_19 [1] : vector<32x16xf32> to vector<32xf32>
    %28 = vector.shape_cast %27 : vector<32xf32> to vector<32x1xf32>
    %cst_20 = arith.constant 1.600000e+01 : f32
    %29 = vector.broadcast %cst_20 : f32 to vector<32x1xf32>
    %30 = arith.divf %28, %29 : vector<32x1xf32>
    %31 = vector.broadcast %23 : vector<32x1xf32> to vector<32x16xf32>
    %32 = arith.subf %17, %31 : vector<32x16xf32>
    %cst_21 = arith.constant 9.99999974E-6 : f32
    %33 = vector.broadcast %cst_21 : f32 to vector<32x1xf32>
    %34 = arith.addf %30, %33 : vector<32x1xf32>
    %35 = math.rsqrt %34 : vector<32x1xf32>
    %36 = vector.broadcast %35 : vector<32x1xf32> to vector<32x16xf32>
    %37 = arith.mulf %32, %36 : vector<32x16xf32>
    %38 = vector.broadcast %18 : vector<1x16xf32> to vector<32x16xf32>
    %39 = arith.mulf %37, %38 : vector<32x16xf32>
    %40 = vector.broadcast %19 : vector<1x16xf32> to vector<32x16xf32>
    %41 = arith.addf %39, %40 : vector<32x16xf32>
    %cst_22 = arith.constant 0.000000e+00 : f32
    %42 = vector.broadcast %cst_22 : f32 to vector<32x16xf32>
    %43 = arith.maximumf %41, %42 : vector<32x16xf32>
    %c0_23 = arith.constant 0 : index
    %c0_24 = arith.constant 0 : index
    %44 = vector.load %arg10[%c0_23, %c0_24] : memref<16x32xf32, #tpu.memory_space<vmem>>, vector<16x32xf32>
    %cst_25 = arith.constant dense<0.000000e+00> : vector<32x32xf32>
    %45 = tpu.matmul %43, %44, %cst_25 {dimension_numbers = #tpu.dot_dimension_numbers<[1], [0], [0], [1], [0, 0, 1, 1], [], []>} : vector<32x16xf32>, vector<16x32xf32>, vector<32x32xf32> -> vector<32x32xf32>
    %c0_26 = arith.constant 0 : index
    %c0_27 = arith.constant 0 : index
    %46 = vector.load %arg11[%c0_26, %c0_27] : memref<1x32xf32, #tpu.memory_space<vmem>>, vector<1x32xf32>
    %47 = vector.broadcast %46 : vector<1x32xf32> to vector<32x32xf32>
    %48 = arith.addf %45, %47 : vector<32x32xf32>
    %c0_28 = arith.constant 0 : index
    %c0_29 = arith.constant 0 : index
    %49 = vector.load %arg12[%c0_28, %c0_29] : memref<1x32xf32, #tpu.memory_space<vmem>>, vector<1x32xf32>
    %c0_30 = arith.constant 0 : index
    %c0_31 = arith.constant 0 : index
    %50 = vector.load %arg13[%c0_30, %c0_31] : memref<1x32xf32, #tpu.memory_space<vmem>>, vector<1x32xf32>
    %cst_32 = arith.constant dense<0.000000e+00> : vector<32xf32>
    %51 = vector.multi_reduction <add>, %48, %cst_32 [1] : vector<32x32xf32> to vector<32xf32>
    %52 = vector.shape_cast %51 : vector<32xf32> to vector<32x1xf32>
    %cst_33 = arith.constant 3.200000e+01 : f32
    %53 = vector.broadcast %cst_33 : f32 to vector<32x1xf32>
    %54 = arith.divf %52, %53 : vector<32x1xf32>
    %55 = vector.broadcast %54 : vector<32x1xf32> to vector<32x32xf32>
    %56 = arith.subf %48, %55 : vector<32x32xf32>
    %57 = arith.mulf %56, %56 : vector<32x32xf32>
    %cst_34 = arith.constant dense<0.000000e+00> : vector<32xf32>
    %58 = vector.multi_reduction <add>, %57, %cst_34 [1] : vector<32x32xf32> to vector<32xf32>
    %59 = vector.shape_cast %58 : vector<32xf32> to vector<32x1xf32>
    %cst_35 = arith.constant 3.200000e+01 : f32
    %60 = vector.broadcast %cst_35 : f32 to vector<32x1xf32>
    %61 = arith.divf %59, %60 : vector<32x1xf32>
    %62 = vector.broadcast %54 : vector<32x1xf32> to vector<32x32xf32>
    %63 = arith.subf %48, %62 : vector<32x32xf32>
    %cst_36 = arith.constant 9.99999974E-6 : f32
    %64 = vector.broadcast %cst_36 : f32 to vector<32x1xf32>
    %65 = arith.addf %61, %64 : vector<32x1xf32>
    %66 = math.rsqrt %65 : vector<32x1xf32>
    %67 = vector.broadcast %66 : vector<32x1xf32> to vector<32x32xf32>
    %68 = arith.mulf %63, %67 : vector<32x32xf32>
    %69 = vector.broadcast %49 : vector<1x32xf32> to vector<32x32xf32>
    %70 = arith.mulf %68, %69 : vector<32x32xf32>
    %71 = vector.broadcast %50 : vector<1x32xf32> to vector<32x32xf32>
    %72 = arith.addf %70, %71 : vector<32x32xf32>
    %c0_37 = arith.constant 0 : index
    %c0_38 = arith.constant 0 : index
    %73 = vector.load %arg14[%c0_37, %c0_38] : memref<32x64xf32, #tpu.memory_space<vmem>>, vector<32x64xf32>
    %cst_39 = arith.constant dense<0.000000e+00> : vector<32x64xf32>
    %74 = tpu.matmul %72, %73, %cst_39 {dimension_numbers = #tpu.dot_dimension_numbers<[1], [0], [0], [1], [0, 0, 1, 1], [], []>} : vector<32x32xf32>, vector<32x64xf32>, vector<32x64xf32> -> vector<32x64xf32>
    %c0_40 = arith.constant 0 : index
    %c0_41 = arith.constant 0 : index
    %75 = vector.load %arg15[%c0_40, %c0_41] : memref<1x64xf32, #tpu.memory_space<vmem>>, vector<1x64xf32>
    %76 = vector.broadcast %75 : vector<1x64xf32> to vector<32x64xf32>
    %77 = arith.addf %74, %76 : vector<32x64xf32>
    %c0_42 = arith.constant 0 : index
    %c0_43 = arith.constant 0 : index
    %78 = vector.load %arg16[%c0_42, %c0_43] : memref<32x64xf32, #tpu.memory_space<vmem>>, vector<32x64xf32>
    tpu.vector_store %arg16[%c0_42, %c0_43], %77 {strides = array<i32>} : memref<32x64xf32, #tpu.memory_space<vmem>>, vector<32x64xf32>,
    return
  }
  func.func @transform_0(%arg0: i32) -> (i32, i32) {
    %c0_i32 = arith.constant 0 : i32
    %c0_i32_0 = arith.constant 0 : i32
    return %arg0, %c0_i32 : i32, i32
  }
  func.func @transform_1(%arg0: i32) -> (i32, i32) {
    %c0_i32 = arith.constant 0 : i32
    %c0_i32_0 = arith.constant 0 : i32
    return %arg0, %c0_i32 : i32, i32
  }
  func.func @transform_2(%arg0: i32) -> (i32, i32) {
    %c0_i32 = arith.constant 0 : i32
    %c0_i32_0 = arith.constant 0 : i32
    return %arg0, %c0_i32 : i32, i32
  }
  func.func @transform_3(%arg0: i32) -> (i32, i32) {
    %c0_i32 = arith.constant 0 : i32
    %c0_i32_0 = arith.constant 0 : i32
    %c0_i32_1 = arith.constant 0 : i32
    return %c0_i32, %c0_i32_0 : i32, i32
  }
  func.func @transform_4(%arg0: i32) -> (i32, i32) {
    %c0_i32 = arith.constant 0 : i32
    %c0_i32_0 = arith.constant 0 : i32
    %c0_i32_1 = arith.constant 0 : i32
    return %c0_i32, %c0_i32_0 : i32, i32
  }
  func.func @transform_5(%arg0: i32) -> (i32, i32) {
    %c0_i32 = arith.constant 0 : i32
    %c0_i32_0 = arith.constant 0 : i32
    %c0_i32_1 = arith.constant 0 : i32
    return %c0_i32, %c0_i32_0 : i32, i32
  }
  func.func @transform_6(%arg0: i32) -> (i32, i32) {
    %c0_i32 = arith.constant 0 : i32
    %c0_i32_0 = arith.constant 0 : i32
    %c0_i32_1 = arith.constant 0 : i32
    return %c0_i32, %c0_i32_0 : i32, i32
  }
  func.func @transform_7(%arg0: i32) -> (i32, i32) {
    %c0_i32 = arith.constant 0 : i32
    %c0_i32_0 = arith.constant 0 : i32
    %c0_i32_1 = arith.constant 0 : i32
    return %c0_i32, %c0_i32_0 : i32, i32
  }
  func.func @transform_8(%arg0: i32) -> (i32, i32) {
    %c0_i32 = arith.constant 0 : i32
    %c0_i32_0 = arith.constant 0 : i32
    %c0_i32_1 = arith.constant 0 : i32
    return %c0_i32, %c0_i32_0 : i32, i32
  }
  func.func @transform_9(%arg0: i32) -> (i32, i32) {
    %c0_i32 = arith.constant 0 : i32
    %c0_i32_0 = arith.constant 0 : i32
    %c0_i32_1 = arith.constant 0 : i32
    return %c0_i32, %c0_i32_0 : i32, i32
  }
  func.func @transform_10(%arg0: i32) -> (i32, i32) {
    %c0_i32 = arith.constant 0 : i32
    %c0_i32_0 = arith.constant 0 : i32
    %c0_i32_1 = arith.constant 0 : i32
    return %c0_i32, %c0_i32_0 : i32, i32
  }
  func.func @transform_11(%arg0: i32) -> (i32, i32) {
    %c0_i32 = arith.constant 0 : i32
    %c0_i32_0 = arith.constant 0 : i32
    %c0_i32_1 = arith.constant 0 : i32
    return %c0_i32, %c0_i32_0 : i32, i32
  }
  func.func @transform_12(%arg0: i32) -> (i32, i32) {
    %c0_i32 = arith.constant 0 : i32
    %c0_i32_0 = arith.constant 0 : i32
    %c0_i32_1 = arith.constant 0 : i32
    return %c0_i32, %c0_i32_0 : i32, i32
  }
  func.func @transform_13(%arg0: i32) -> (i32, i32) {
    %c0_i32 = arith.constant 0 : i32
    %c0_i32_0 = arith.constant 0 : i32
    %c0_i32_1 = arith.constant 0 : i32
    return %c0_i32, %c0_i32_0 : i32, i32
  }
  func.func @transform_14(%arg0: i32) -> (i32, i32) {
    %c0_i32 = arith.constant 0 : i32
    %c0_i32_0 = arith.constant 0 : i32
    %c0_i32_1 = arith.constant 0 : i32
    return %c0_i32, %c0_i32_0 : i32, i32
  }
  func.func @transform_15(%arg0: i32) -> (i32, i32) {
    %c0_i32 = arith.constant 0 : i32
    %c0_i32_0 = arith.constant 0 : i32
    return %arg0, %c0_i32 : i32, i32
  }
}

</mosaic_0001>

<bundles_post_ra>
// kernel: tpu_custom_call.1
= control target key start
LH: loop header
LB: loop body
LE: loop exit
PB: predicated region body
PF: predicated region fallthrough
CT: control target
= control target key end

     0   :  { %vm91_vm0 = vcmask 64512   ;;  %v754_v5 = vmov 0   ;;  %s953_s0 = inlined_call_operand.vmem [shape: f32[32,8], index: 0, kind: input, shape index: {}]   ;;  %s954_s1 = inlined_call_operand.vmem [shape: f32[32,1], index: 1, kind: input, shape index: {}]   ;;  %s955_s2 = inlined_call_operand.vmem [shape: f32[32,1], index: 2, kind: input, shape index: {}]   ;;  %s956_s3 = inlined_call_operand.vmem [shape: f32[8,16], index: 3, kind: input, shape index: {}]   ;;  %s957_s4 = inlined_call_operand.vmem [shape: f32[1,16], index: 4, kind: input, shape index: {}]   ;;  %s958_s5 = inlined_call_operand.vmem [shape: f32[1,16], index: 5, kind: input, shape index: {}]   ;;  %s959_s6 = inlined_call_operand.vmem [shape: f32[1,16], index: 6, kind: input, shape index: {}]   ;;  %s960_s7 = inlined_call_operand.vmem [shape: f32[1,16], index: 7, kind: input, shape index: {}]   ;;  %s961_s8 = inlined_call_operand.vmem [shape: f32[1,16], index: 8, kind: input, shape index: {}]   ;;  %s962_s9 = inlined_call_operand.vmem [shape: f32[16,32], index: 9, kind: input, shape index: {}]   ;;  %s963_s10 = inlined_call_operand.vmem [shape: f32[1,32], index: 10, kind: input, shape index: {}]   ;;  %s964_s11 = inlined_call_operand.vmem [shape: f32[1,32], index: 11, kind: input, shape index: {}]   ;;  %s965_s12 = inlined_call_operand.vmem [shape: f32[1,32], index: 12, kind: input, shape index: {}]   ;;  %s966_s13 = inlined_call_operand.vmem [shape: f32[32,64], index: 13, kind: input, shape index: {}]   ;;  %s967_s14 = inlined_call_operand.vmem [shape: f32[1,64], index: 14, kind: input, shape index: {}]   ;;  %s968_s15 = inlined_call_operand.hbm [shape: f32[32,64], index: 15, kind: output, shape index: {}]  }
   0x1   :  { %v55_v0 = vld [vmem:[%s956_s3] sm:$0xff]  ;;  %v52_v2 = vld [vmem:[%s953_s0 + $0x8] sm:$0xff]  ;;  %v53_v3 = vld [vmem:[%s953_s0 + $0x10] sm:$0xff]  ;;  %714 = vset.pattern.permute.xlu0 %v754_v5  ;;  %715 = vset.pattern.permute.xlu1 %v754_v5 }
   0x2   :  { %v51_v1 = vld [vmem:[%s953_s0] sm:$0xff]  ;;  %670 = vmatprep.subr.mxu0 %v55_v0  ;;  %v54_v7 = vld [vmem:[%s953_s0 + $0x18] sm:$0xff]  ;;  %v57_v8 = vld [vmem:[%s954_s1 + $0x8] sm:$0xff] }
   0x3   :  { %672 = vmatprep.mubr.msk.f32.mxu0 %vm91_vm0, %v51_v1  ;;  %v56_v4 = vld [vmem:[%s954_s1] sm:$0xff]  ;;  %671 = vmatpush3.msra.mxu0 %v55_v0 }
   0x4   :  { %v189_v6 = vld [vmem:[%s955_s2] sm:$0xff]  ;;  %673 = vmatmul.mubr.msk.f32.vlgmr.msra.gmra.mxu0 %vm91_vm0, %v52_v2  ;;  %63 = vperm.xlu0 %714, %v56_v4  }
   0x5   :  { %675 = vmatprep.mubr.msk.f32.mxu0 %vm91_vm0, %v53_v3  ;;  %196 = vperm.xlu1 %715, %v189_v6  }
   0x6   :  { %20 = vsyncpa [#allocation3], 0  ;;  %v190_v9 = vld [vmem:[%s955_s2 + $0x8] sm:$0xff]  ;;  %v58_v10 = vld [vmem:[%s954_s1 + $0x10] sm:$0xff]  ;;  %vm241_vm1 = vcmask 130048   ;;  %vm427_vm2 = vcmask 261120  }
   0x7   :  { %v59_v11 = vld [vmem:[%s954_s1 + $0x18] sm:$0xff]  ;;  %v191_v12 = vld [vmem:[%s955_s2 + $0x10] sm:$0xff]  ;;  %v630_v18 = vld [vmem:[%s957_s4] ss:$0 sm:$0xff]  ;;  %vm609_vm3 = vcmask 523264   ;;  %s755_s3 = smov [#allocation2]  }
   0x8   :  { %676 = vmatmul.mubr.msk.f32.gmra.mxu0 %vm91_vm0, %v54_v7  ;;  %68 = vperm.xlu0 %714, %v57_v8   ;;  %v192_v13 = vld [vmem:[%s955_s2 + $0x18] sm:$0xff]  ;;  %v635_v22 = vld [vmem:[%s958_s5] ss:$0 sm:$0xff]  ;;  %s619_s1 = sshll.u32 %s755_s3, 4  ;;  %s620_s1 = int_to_ptr.vmem [resolvable:$true] %s619_s1 }
   0x9   :  { %201 = vperm.xlu1 %715, %v190_v9   ;;  %v636_v28 = vld [vmem:[%s959_s6] ss:$0 sm:$0xff]  ;;  %v320_v9 = vld [vmem:[%s962_s9 + $0x8] sm:$0xff]  ;;  %s732_s28 = scalar_lea.vmem %s620_s1, 512  ;;  %p737_p1 = scmp.lt.s32.totalorder %s620_s1, %s620_s1 }
   0xa   :  { %678 = vmatprep.subr.mxu1 %v320_v9  ;;  %p733_p0 = scmp.ne.s32.totalorder %s620_s1, %s732_s28  ;;  %p738_p2 = scmp.lt.s32.totalorder %s732_s28, %s732_s28 }
   0xb   :  { %679 = vmatpush3.msra.mxu1 %v320_v9 }
   0xc   :  { %73 = vperm.xlu0 %714, %v58_v10   ;;  %v319_v10 = vld [vmem:[%s962_s9] sm:$0xff]  ;;  %p739_p3 = por %p738_p2, %p737_p1 }
   0xd   :  { %78 = vperm.xlu1 %715, %v59_v11   ;;  %680 = vmatprep.subr.mxu1 %v319_v10 }
   0xe   :  { %681 = vmatpush3.msra.mxu1 %v319_v10  ;;  %p740_p4 = pnand %p739_p3, %p733_p0 }
  0x10   :  { %206 = vperm.xlu0 %714, %v191_v12  }
  0x11   :  { %211 = vperm.xlu1 %715, %v192_v13  }
  0x7f   :  { %v64_v14 = vpop.permute.xlu0 %63 }
  0x80   :  { %v197_v15 = vpop.permute.xlu1 %196  ;;  %v87_v24 = vmul.f32 %v630_v18, %v64_v14 }
  0x81   :  { %v220_v29 = vmul.f32 %v635_v22, %v197_v15 }
  0x83   :  { %v69_v16 = vpop.permute.xlu0 %68 }
  0x84   :  { %v202_v17 = vpop.permute.xlu1 %201  ;;  %v88_v21 = vmul.f32 %v630_v18, %v69_v16 }
  0x85   :  { %v221_v25 = vmul.f32 %v635_v22, %v202_v17 }
  0x87   :  { %v74_v19 = vpop.permute.xlu0 %73 }
  0x88   :  { %v79_v20 = vpop.permute.xlu1 %78  ;;  %v89_v36 = vmul.f32 %v630_v18, %v74_v19 }
  0x89   :  { %v90_v30 = vmul.f32 %v630_v18, %v79_v20 }
  0x8b   :  { %v207_v31 = vpop.permute.xlu0 %206 }
  0x8c   :  { %v212_v34 = vpop.permute.xlu1 %211  ;;  %v222_v40 = vmul.f32 %v635_v22, %v207_v31 }
  0x8d   :  { %v223_v42 = vmul.f32 %v635_v22, %v212_v34 }
  0xc4   :  { %v674_v23 = vpop.f32.mrf.mxu0 }
  0xc5   :  { %v176_v26 = vadd.f32 %v674_v23, %v88_v21 }
  0xc6   :  { %v170_v27 = vpop.f32.mrf.mxu0 }
  0xc7   :  { %v225_v32 = vadd.f32 %v221_v25, %v176_v26  ;;  %v171_v33 = vadd.f32 %v170_v27, %v87_v24  ;;  %v637_v24 = vld [vmem:[%s960_s7] ss:$0 sm:$0xff] }
  0xc8   :  { %v677_v35 = vpop.f32.mrf.mxu0  ;;  %v638_v27 = vld [vmem:[%s961_s8] ss:$0 sm:$0xff] }
  0xc9   :  { %v224_v37 = vadd.f32 %v220_v29, %v171_v33  ;;  %v186_v38 = vadd.f32 %v677_v35, %v90_v30  ;;  %v236_v39 = vadd.f32 %v636_v28, %v225_v32 }
  0xca   :  { %v180_v41 = vpop.f32.mrf.mxu0 }
  0xcb   :  { %v181_v43 = vadd.f32 %v180_v41, %v89_v36  ;;  %v245_v44 = vsel %vm241_vm1, %v236_v39, 0.0  ;;  %v235_v45 = vadd.f32 %v636_v28, %v224_v37  ;;  %v227_v46 = vadd.f32 %v223_v42, %v186_v38 }
  0xcc   :  { %246 = vadd.xlane.f32.xlu1 %v245_v44 }
  0xcd   :  { %v226_v47 = vadd.f32 %v222_v40, %v181_v43  ;;  %v242_v48 = vsel %vm241_vm1, %v235_v45, 0.0  ;;  %v238_v51 = vadd.f32 %v636_v28, %v227_v46  ;;  %v639_v46 = vld [vmem:[%s963_s10] ss:$0 sm:$0xff] }
  0xce   :  { %243 = vadd.xlane.f32.xlu0 %v242_v48 }
  0xcf   :  { %v237_v49 = vadd.f32 %v636_v28, %v226_v47  ;;  %v251_v52 = vsel %vm241_vm1, %v238_v51, 0.0 }
  0xd1   :  { %v248_v50 = vsel %vm241_vm1, %v237_v49, 0.0 }
  0xd2   :  { %249 = vadd.xlane.f32.xlu0 %v248_v50 }
  0xd6   :  { %252 = vadd.xlane.f32.xlu0 %v251_v52 }
 0x155   :  { %v247_v53 = vpop.xlane.xlu1 %246 }
 0x156   :  { %v256_v54 = vmul.f32 0.0625, %v247_v53 }
 0x157   :  { %v244_v55 = vpop.xlane.xlu0 %243 }
 0x158   :  { %v260_v56 = vsub.f32 %v236_v39, %v256_v54  ;;  %v255_v57 = vmul.f32 0.0625, %v244_v55 }
 0x15a   :  { %v259_v58 = vsub.f32 %v235_v45, %v255_v57  ;;  %v264_v59 = vmul.f32 %v260_v56, %v260_v56 }
 0x15b   :  { %v250_v60 = vpop.xlane.xlu0 %249 }
 0x15c   :  { %v257_v61 = vmul.f32 0.0625, %v250_v60  ;;  %v270_v62 = vsel %vm241_vm1, %v264_v59, 0.0  ;;  %v263_v63 = vmul.f32 %v259_v58, %v259_v58 }
 0x15d   :  { %271 = vadd.xlane.f32.xlu0 %v270_v62 }
 0x15e   :  { %v261_v0 = vsub.f32 %v237_v49, %v257_v61  ;;  %v267_v1 = vsel %vm241_vm1, %v263_v63, 0.0 }
 0x15f   :  { %268 = vadd.xlane.f32.xlu1 %v267_v1  ;;  %v253_v2 = vpop.xlane.xlu0 %252 }
 0x160   :  { %v258_v3 = vmul.f32 0.0625, %v253_v2  ;;  %v265_v4 = vmul.f32 %v261_v0, %v261_v0 }
 0x162   :  { %v262_v5 = vsub.f32 %v238_v51, %v258_v3  ;;  %v273_v6 = vsel %vm241_vm1, %v265_v4, 0.0 }
 0x163   :  { %274 = vadd.xlane.f32.xlu1 %v273_v6 }
 0x164   :  { %v266_v7 = vmul.f32 %v262_v5, %v262_v5 }
 0x166   :  { %v276_v8 = vsel %vm241_vm1, %v266_v7, 0.0 }
 0x167   :  { %277 = vadd.xlane.f32.xlu0 %v276_v8 }
 0x1e6   :  { %v272_v11 = vpop.xlane.xlu0 %271 }
 0x1e7   :  { %v280_v12 = vmul.f32 0.0625, %v272_v11 }
 0x1e8   :  { %v269_v13 = vpop.xlane.xlu1 %268 }
 0x1e9   :  { %v284_v14 = vadd.f32 1e-05, %v280_v12  ;;  %v279_v15 = vmul.f32 0.0625, %v269_v13 }
 0x1eb   :  { %716 = vrsqrt.f32 %v284_v14  ;;  %v283_v16 = vadd.f32 1e-05, %v279_v15  ;;  %v504_v14 = vld [vmem:[%s966_s13 + $0x18] sm:$0xff]  ;;  %v503_v15 = vld [vmem:[%s966_s13 + $0x10] sm:$0xff] }
 0x1ec   :  { %v275_v17 = vpop.xlane.xlu1 %274  ;;  %688 = vmatprep.subr.mxu0 %v504_v14  ;;  %702 = vmatprep.subr.mxu1 %v504_v14 }
 0x1ed   :  { %718 = vrsqrt.f32 %v283_v16  ;;  %v281_v18 = vmul.f32 0.0625, %v275_v17  ;;  %689 = vmatpush3.msra.mxu0 %v504_v14  ;;  %v502_v16 = vld [vmem:[%s966_s13 + $0x8] sm:$0xff]  ;;  %v501_v17 = vld [vmem:[%s966_s13] sm:$0xff] }
 0x1ee   :  { %690 = vmatprep.subr.mxu0 %v503_v15 }
 0x1ef   :  { %v285_v19 = vadd.f32 1e-05, %v281_v18  ;;  %691 = vmatpush3.msra.mxu0 %v503_v15 }
 0x1f0   :  { %v278_v20 = vpop.xlane.xlu0 %277  ;;  %692 = vmatprep.subr.mxu0 %v502_v16 }
 0x1f1   :  { %720 = vrsqrt.f32 %v285_v19  ;;  %v282_v21 = vmul.f32 0.0625, %v278_v20  ;;  %693 = vmatpush3.msra.mxu0 %v502_v16 }
 0x1f2   :  { %694 = vmatprep.subr.mxu0 %v501_v17 }
 0x1f3   :  { %v286_v22 = vadd.f32 1e-05, %v282_v21  ;;  %695 = vmatpush3.msra.mxu0 %v501_v17 }
 0x1f5   :  { %722 = vrsqrt.f32 %v286_v22 }
 0x1f8   :  { %v717_v23 = vpop.eup %716 }
 0x1f9   :  { %v292_v25 = vmul.f32 %v717_v23, %v260_v56 }
 0x1fa   :  { %v719_v26 = vpop.eup %718 }
 0x1fb   :  { %v291_v28 = vmul.f32 %v719_v26, %v259_v58  ;;  %v302_v29 = vmul.f32 %v637_v24, %v292_v25 }
 0x1fd   :  { %v301_v30 = vmul.f32 %v637_v24, %v291_v28  ;;  %v312_v32 = vadd.f32 %v638_v27, %v302_v29 }
 0x1fe   :  { %v721_v31 = vpop.eup %720 }
 0x1ff   :  { %v311_v33 = vadd.f32 %v638_v27, %v301_v30  ;;  %v293_v34 = vmul.f32 %v721_v31, %v261_v0  ;;  %v316_v38 = vmax.f32 %v312_v32, 0.0  ;;  %v644_v31 = vld [vmem:[%s964_s11] ss:$0 sm:$0xff] }
 0x201   :  { %v315_v35 = vmax.f32 %v311_v33, 0.0  ;;  %v303_v36 = vmul.f32 %v637_v24, %v293_v34  ;;  %v645_v33 = vld [vmem:[%s965_s12] ss:$0 sm:$0xff] }
 0x202   :  { %v723_v37 = vpop.eup %722 }
 0x203   :  { %682 = vmatprep.mubr.msk.f32.mxu1 %vm241_vm1, %v315_v35  ;;  %v313_v39 = vadd.f32 %v638_v27, %v303_v36  ;;  %v294_v40 = vmul.f32 %v723_v37, %v262_v5 }
 0x204   :  { %683 = vmatmul.mubr.msk.f32.vlgmr.msra.gmra.mxu1 %vm241_vm1, %v316_v38 }
 0x205   :  { %v317_v41 = vmax.f32 %v313_v39, 0.0  ;;  %v304_v42 = vmul.f32 %v637_v24, %v294_v40  ;;  %706 = vmatpush3.msra.mxu1 %v504_v14 }
 0x206   :  { %703 = vmatprep.subr.mxu1 %v503_v15 }
 0x207   :  { %685 = vmatprep.mubr.msk.f32.mxu1 %vm241_vm1, %v317_v41  ;;  %v314_v43 = vadd.f32 %v638_v27, %v304_v42  ;;  %707 = vmatpush3.msra.mxu1 %v503_v15 }
 0x208   :  { %704 = vmatprep.subr.mxu1 %v502_v16 }
 0x209   :  { %v318_v44 = vmax.f32 %v314_v43, 0.0  ;;  %708 = vmatpush3.msra.mxu1 %v502_v16 }
 0x20a   :  { %705 = vmatprep.subr.mxu1 %v501_v17 }
 0x20b   :  { %686 = vmatmul.mubr.msk.f32.gmra.mxu1 %vm241_vm1, %v318_v44 }
 0x20c   :  { %709 = vmatpush3.msra.mxu1 %v501_v17 }
 0x2c4   :  { %v684_v45 = vpop.f32.mrf.mxu1 }
 0x2c5   :  { %v412_v49 = vadd.f32 %v684_v45, %v639_v46 }
 0x2c6   :  { %v406_v47 = vpop.f32.mrf.mxu1 }
 0x2c7   :  { %v407_v48 = vadd.f32 %v639_v46, %v406_v47  ;;  %v431_v53 = vsel %vm427_vm2, %v412_v49, 0.0 }
 0x2c9   :  { %v428_v50 = vsel %vm427_vm2, %v407_v48, 0.0 }
 0x2ca   :  { %429 = vadd.xlane.f32.xlu1 %v428_v50 }
 0x2cb   :  { %v687_v51 = vpop.f32.mrf.mxu1 }
 0x2cc   :  { %v422_v55 = vadd.f32 %v687_v51, %v639_v46 }
 0x2cd   :  { %v416_v52 = vpop.f32.mrf.mxu1 }
 0x2ce   :  { %v417_v54 = vadd.f32 %v639_v46, %v416_v52  ;;  %432 = vadd.xlane.f32.xlu1 %v431_v53  ;;  %v437_v57 = vsel %vm427_vm2, %v422_v55, 0.0 }
 0x2d0   :  { %v434_v56 = vsel %vm427_vm2, %v417_v54, 0.0 }
 0x2d1   :  { %435 = vadd.xlane.f32.xlu0 %v434_v56 }
 0x2d5   :  { %438 = vadd.xlane.f32.xlu0 %v437_v57 }
 0x353   :  { %v430_v58 = vpop.xlane.xlu1 %429 }
 0x354   :  { %v441_v59 = vmul.f32 0.03125, %v430_v58 }
 0x356   :  { %v445_v60 = vsub.f32 %v407_v48, %v441_v59  ;;  %v646_v48 = vld [vmem:[%s967_s14] ss:$0 sm:$0xff] }
 0x357   :  { %v433_v61 = vpop.xlane.xlu1 %432 }
 0x358   :  { %v442_v62 = vmul.f32 0.03125, %v433_v61  ;;  %v449_v63 = vmul.f32 %v445_v60, %v445_v60 }
 0x35a   :  { %v446_v0 = vsub.f32 %v412_v49, %v442_v62  ;;  %v436_v1 = vpop.xlane.xlu0 %435  ;;  %v453_v2 = vsel %vm427_vm2, %v449_v63, 0.0 }
 0x35b   :  { %v443_v3 = vmul.f32 0.03125, %v436_v1  ;;  %454 = vadd.xlane.f32.xlu1 %v453_v2 }
 0x35c   :  { %v450_v4 = vmul.f32 %v446_v0, %v446_v0 }
 0x35d   :  { %v447_v5 = vsub.f32 %v417_v54, %v443_v3 }
 0x35e   :  { %v439_v6 = vpop.xlane.xlu0 %438  ;;  %v456_v7 = vsel %vm427_vm2, %v450_v4, 0.0 }
 0x35f   :  { %v444_v8 = vmul.f32 0.03125, %v439_v6  ;;  %457 = vadd.xlane.f32.xlu1 %v456_v7  ;;  %v451_v9 = vmul.f32 %v447_v5, %v447_v5 }
 0x361   :  { %v448_v10 = vsub.f32 %v422_v55, %v444_v8  ;;  %v459_v11 = vsel %vm427_vm2, %v451_v9, 0.0 }
 0x362   :  { %460 = vadd.xlane.f32.xlu0 %v459_v11 }
 0x363   :  { %v452_v12 = vmul.f32 %v448_v10, %v448_v10 }
 0x365   :  { %v462_v13 = vsel %vm427_vm2, %v452_v12, 0.0 }
 0x366   :  { %463 = vadd.xlane.f32.xlu0 %v462_v13 }
 0x3e4   :  { %v455_v18 = vpop.xlane.xlu1 %454 }
 0x3e5   :  { %v465_v19 = vmul.f32 0.03125, %v455_v18 }
 0x3e7   :  { %v469_v20 = vadd.f32 1e-05, %v465_v19 }
 0x3e8   :  { %v458_v21 = vpop.xlane.xlu1 %457 }
 0x3e9   :  { %724 = vrsqrt.f32 %v469_v20  ;;  %v466_v22 = vmul.f32 0.03125, %v458_v21 }
 0x3eb   :  { %v470_v23 = vadd.f32 1e-05, %v466_v22  ;;  %v461_v24 = vpop.xlane.xlu0 %460 }
 0x3ec   :  { %v467_v25 = vmul.f32 0.03125, %v461_v24 }
 0x3ed   :  { %726 = vrsqrt.f32 %v470_v23 }
 0x3ee   :  { %v471_v26 = vadd.f32 1e-05, %v467_v25 }
 0x3ef   :  { %v464_v27 = vpop.xlane.xlu0 %463 }
 0x3f0   :  { %728 = vrsqrt.f32 %v471_v26  ;;  %v468_v28 = vmul.f32 0.03125, %v464_v27 }
 0x3f2   :  { %v472_v29 = vadd.f32 1e-05, %v468_v28 }
 0x3f4   :  { %730 = vrsqrt.f32 %v472_v29 }
 0x3f6   :  { %v725_v30 = vpop.eup %724 }
 0x3f7   :  { %v477_v32 = vmul.f32 %v725_v30, %v445_v60 }
 0x3f9   :  { %v487_v34 = vmul.f32 %v644_v31, %v477_v32 }
 0x3fa   :  { %v727_v35 = vpop.eup %726 }
 0x3fb   :  { %v478_v36 = vmul.f32 %v727_v35, %v446_v0  ;;  %v497_v37 = vadd.f32 %v645_v33, %v487_v34 }
 0x3fd   :  { %v729_v38 = vpop.eup %728  ;;  %v488_v39 = vmul.f32 %v644_v31, %v478_v36  ;;  %696 = vmatprep.mubr.msk.f32.mxu0 %vm427_vm2, %v497_v37 }
 0x3fe   :  { %v479_v40 = vmul.f32 %v729_v38, %v447_v5 }
 0x3ff   :  { %v498_v41 = vadd.f32 %v645_v33, %v488_v39 }
 0x400   :  { %v489_v42 = vmul.f32 %v644_v31, %v479_v40 }
 0x401   :  { %v731_v43 = vpop.eup %730  ;;  %697 = vmatmul.mubr.msk.f32.vlgmr.msra.gmra.mxu0 %vm427_vm2, %v498_v41 }
 0x402   :  { %v480_v44 = vmul.f32 %v731_v43, %v448_v10  ;;  %v499_v45 = vadd.f32 %v645_v33, %v489_v42 }
 0x404   :  { %v490_v46 = vmul.f32 %v644_v31, %v480_v44  ;;  %699 = vmatprep.mubr.msk.f32.mxu1 %vm427_vm2, %v499_v45 }
 0x406   :  { %v500_v47 = vadd.f32 %v645_v33, %v490_v46 }
 0x408   :  { %700 = vmatmul.mubr.msk.f32.vlgmr.msra.gmra.mxu1 %vm427_vm2, %v500_v47 }
 0x4c1   :  { %v698_v49 = vpop.f32.mrf.mxu0 }
 0x4c2   :  { %v596_v50 = vadd.f32 %v698_v49, %v646_v48 }
 0x4c3   :  { %v590_v51 = vpop.f32.mrf.mxu0 }
 0x4c4   :  { %611 = vst.msk [vmem:[#allocation2 + $0x8] sm:$0xff] %vm609_vm3, %v596_v50  ;;  %v591_v52 = vadd.f32 %v646_v48, %v590_v51 }
 0x4c6   :  { %610 = vst.msk [vmem:[#allocation2] sm:$0xff] %vm609_vm3, %v591_v52 }
 0x4c8   :  { %v701_v53 = vpop.f32.mrf.mxu1 }
 0x4c9   :  { %v606_v54 = vadd.f32 %v701_v53, %v646_v48 }
 0x4ca   :  { %v600_v55 = vpop.f32.mrf.mxu1 }
 0x4cb   :  { %613 = vst.msk [vmem:[#allocation2 + $0x18] sm:$0xff] %vm609_vm3, %v606_v54  ;;  %v601_v56 = vadd.f32 %v646_v48, %v600_v55 }
 0x4cd   :  { %612 = vst.msk [vmem:[#allocation2 + $0x10] sm:$0xff] %vm609_vm3, %v601_v56 }
 0x4ce   :  { %743 = shalt.err (!%p740_p4)
}
 0x4cf   :  { %s756_s14 = smov 128   ;;  %s757_s2 = smov 8  }
 0x4d0   :  { %625 = dma.vmem_to_hbm [thread:$0]  %s620_s1, 512, %s968_s15, [#allocation3], %s756_s14, %s756_s14, %s757_s2  }
 0x4d1   :  { %752 = dma.done.wait [#allocation3], 512  }
 0x4d2   :  { %753 = vsyncadd [#allocation3], 4294966784 }
 0x4d3   :  { %629 = vsyncpa [#allocation3], 1 }

</bundles_post_ra>
